<compile_context>
chip_gen: v7x
topology: tpu7x:2x2x1
jax: 0.10.0
libtpu: 0.0.40
codegen_flags: <defaults>
</compile_context>

<pallas_src>
import functools
import math

import jax
import jax.numpy as jnp
from jax import lax
from jax.experimental import pallas as pl
from jax.experimental.pallas import tpu as pltpu

LANE = 128
SUBLANE = 8


def _round_up(x, m):
    return (x + m - 1) // m * m


def _pick_tile(s, target):
    """Largest tile <= target that divides s, preferring multiples of 128."""
    cap = max(SUBLANE, min(s, target))
    for step in (LANE, SUBLANE):
        t = (cap // step) * step
        while t >= step:
            if s % t == 0:
                return t
            t -= step
    return SUBLANE


def _clamp_for_two_tiles(s, target):
    """Ensure >= 2 tiles along a 'parallel' axis so both v7x TCs get work."""
    if s >= 2 * SUBLANE:
        return min(target, s // 2)
    return target


def _proj_kernel(x_ref, w_ref, q_ref, kv_ref, *, d_pad):
    """Fused projection: X_tile @ [Wq*scale | Wk | Wv] -> (Q_tile, [K|V]_tile)."""
    qkv = jnp.dot(x_ref[...], w_ref[...], preferred_element_type=jnp.float32)
    q_ref[...] = qkv[:, :d_pad].astype(q_ref.dtype)
    kv_ref[...] = qkv[:, d_pad:].astype(kv_ref.dtype)


def _flash_attn_kernel(q_ref, kv_ref, o_ref, m_sc, l_sc, acc_sc, *,
                       d_pad, mxu_dtype):
    ki = pl.program_id(1)

    @pl.when(ki == 0)
    def _init():
        m_sc[...] = jnp.full_like(m_sc, -jnp.inf)
        l_sc[...] = jnp.zeros_like(l_sc)
        acc_sc[...] = jnp.zeros_like(acc_sc)

    kv = kv_ref[...]                        # (tkv, 2*d_pad), mxu dtype
    k = kv[:, :d_pad]
    v = kv[:, d_pad:]

    # Scores: contract last axes directly -> no explicit K transpose.
    # Q already carries the 1/sqrt(d_out) scale (folded into Wq).
    s = lax.dot_general(q_ref[...], k, (((1,), (1,)), ((), ())),
                        preferred_element_type=jnp.float32)   # (tq, tkv) f32

    # Online (streaming) softmax update, all statistics in f32.
    m_prev = m_sc[...]
    m_new = jnp.maximum(m_prev, s.max(axis=-1, keepdims=True))
    alpha = jnp.exp(m_prev - m_new)
    p = jnp.exp(s - m_new)
    l_sc[...] = alpha * l_sc[...] + p.sum(axis=-1, keepdims=True)
    acc_sc[...] = alpha * acc_sc[...] + jnp.dot(
        p.astype(mxu_dtype), v, preferred_element_type=jnp.float32)
    m_sc[...] = m_new

    @pl.when(ki == pl.num_programs(1) - 1)
    def _finalize():
        # Exact divide (runs once per q tile; approx reciprocal not needed).
        o_ref[...] = (acc_sc[...] / l_sc[...]).astype(o_ref.dtype)


def self_attention_v1(x, w_query, w_key, w_value, *,
                      mxu_dtype=jnp.bfloat16,
                      tq_target=256, tkv_target=1024, tproj_target=256):
    """x: (S, d_in); W_*: (d_in, d_out) -> (S, d_out). Matches the torch module."""
    s, d_in = x.shape
    d_out = w_query.shape[1]
    if s % SUBLANE != 0:
        # TODO(synk): pad S and add a -inf mask on padded kv columns for ragged lengths.
        raise ValueError("sequence length must be a multiple of 8")

    d_pad = _round_up(d_out, LANE)
    k_pad = _round_up(d_in, LANE)
    scale = 1.0 / math.sqrt(d_out)          # uses the *unpadded* d_out

    f32 = jnp.float32
    x_p = jnp.pad(x.astype(f32), ((0, 0), (0, k_pad - d_in)))

    def _pad_w(w, s_=1.0):
        return jnp.pad(w.astype(f32) * s_,
                       ((0, k_pad - d_in), (0, d_pad - d_out)))

    # Fold the softmax scale into Wq in f32, then cast MXU inputs once.
    w_packed = jnp.concatenate(
        [_pad_w(w_query, scale), _pad_w(w_key), _pad_w(w_value)], axis=1
    ).astype(mxu_dtype)                                   # (k_pad, 3*d_pad)
    x_c = x_p.astype(mxu_dtype)

    # ---- 1) Fused Q/K/V projection, computed exactly once. ----
    tp = _pick_tile(s, _clamp_for_two_tiles(s, tproj_target))
    q_s, kv_s = pl.pallas_call(
        functools.partial(_proj_kernel, d_pad=d_pad),
        out_shape=(jax.ShapeDtypeStruct((s, d_pad), mxu_dtype),
                   jax.ShapeDtypeStruct((s, 2 * d_pad), mxu_dtype)),
        grid_spec=pltpu.PrefetchScalarGridSpec(
            num_scalar_prefetch=0,
            grid=(s // tp,),
            in_specs=[pl.BlockSpec((tp, k_pad), lambda i: (i, 0)),
                      pl.BlockSpec((k_pad, 3 * d_pad), lambda i: (0, 0))],
            out_specs=[pl.BlockSpec((tp, d_pad), lambda i: (i, 0)),
                       pl.BlockSpec((tp, 2 * d_pad), lambda i: (i, 0))],
        ),
        compiler_params=pltpu.CompilerParams(
            dimension_semantics=("parallel",)),
    )(x_c, w_packed)

    # ---- 2) Flash attention over the projected slabs. ----
    tq = _pick_tile(s, _clamp_for_two_tiles(s, tq_target))
    tkv = _pick_tile(s, tkv_target)
    grid = (s // tq, s // tkv)              # kv axis innermost

    kernel = functools.partial(_flash_attn_kernel, d_pad=d_pad,
                               mxu_dtype=mxu_dtype)
    out_p = pl.pallas_call(
        kernel,
        out_shape=jax.ShapeDtypeStruct((s, d_pad), f32),
        grid_spec=pltpu.PrefetchScalarGridSpec(
            num_scalar_prefetch=0,
            grid=grid,
            in_specs=[
                pl.BlockSpec((tq, d_pad), lambda qi, ki: (qi, 0)),       # Q tile
                pl.BlockSpec((tkv, 2 * d_pad), lambda qi, ki: (ki, 0)),  # [K|V] tile
            ],
            out_specs=pl.BlockSpec((tq, d_pad), lambda qi, ki: (qi, 0)),
            scratch_shapes=[
                pltpu.VMEM((tq, 1), jnp.float32),       # running max
                pltpu.VMEM((tq, 1), jnp.float32),       # running sum
                pltpu.VMEM((tq, d_pad), jnp.float32),   # output accumulator
            ],
        ),
        compiler_params=pltpu.CompilerParams(
            dimension_semantics=("parallel", "arbitrary"),
        ),
    )(q_s, kv_s)

    return out_p[:, :d_out]


def self_attention_ref(x, w_query, w_key, w_value):
    """Pure-JAX f32 reference mirroring the PyTorch forward exactly."""
    keys = x @ w_key
    queries = x @ w_query
    values = x @ w_value
    attn_scores = queries @ keys.T
    attn_weights = jax.nn.softmax(attn_scores / (keys.shape[-1] ** 0.5), axis=-1)
    return attn_weights @ values


def self_attention_ref_lowp(x, w_query, w_key, w_value, dt):
    """Reference with the kernel's bf16 rounding points (f32 accumulation)."""
    f32 = jnp.float32
    scale = 1.0 / math.sqrt(w_query.shape[1])
    q = jnp.dot(x.astype(dt), (w_query * scale).astype(dt),
                preferred_element_type=f32).astype(dt)
    k = jnp.dot(x.astype(dt), w_key.astype(dt),
                preferred_element_type=f32).astype(dt)
    v = jnp.dot(x.astype(dt), w_value.astype(dt),
                preferred_element_type=f32).astype(dt)
    s = jnp.dot(q, k.T, preferred_element_type=f32)
    m = s.max(axis=-1, keepdims=True)
    p = jnp.exp(s - m)
    l = p.sum(axis=-1, keepdims=True)
    return jnp.dot(p.astype(dt), v, preferred_element_type=f32) / l


if __name__ == "__main__":
    # Small shapes consistent with the module; seq > 128 exercises the tiling.
    seq_len, d_in, d_out = 256, 32, 32

    key = jax.random.PRNGKey(0)
    kx, kq, kk, kv = jax.random.split(key, 4)

    x = jax.random.normal(kx, (seq_len, d_in), dtype=jnp.float32)
    # Parameter init mimicking torch.rand(d_in, d_out) (uniform [0, 1)).
    W_query = jax.random.uniform(kq, (d_in, d_out), dtype=jnp.float32)
    W_key = jax.random.uniform(kk, (d_in, d_out), dtype=jnp.float32)
    W_value = jax.random.uniform(kv, (d_in, d_out), dtype=jnp.float32)

    # Production path: bf16 MXU inputs, f32 softmax stats / accumulation.
    out_bf16 = jax.block_until_ready(
        self_attention_v1(x, W_query, W_key, W_value))
    ref_lowp = self_attention_ref_lowp(x, W_query, W_key, W_value, jnp.bfloat16)
    assert out_bf16.shape == (seq_len, d_out)
    assert jnp.allclose(out_bf16, ref_lowp, atol=1e-1, rtol=1e-1), \
        "bf16 kernel mismatch vs bf16-matched reference"

    # Full-precision path: tight parity with the exact torch-style forward.
    out_f32 = jax.block_until_ready(
        self_attention_v1(x, W_query, W_key, W_value, mxu_dtype=jnp.float32))
    ref_f32 = self_attention_ref(x, W_query, W_key, W_value)
    assert jnp.allclose(out_f32, ref_f32, atol=1e-3, rtol=1e-3), \
        "f32 kernel mismatch vs exact reference"

    print("KERNEL_OK")
</pallas_src>

<mosaic_0001>
module attributes {stable_mosaic.version = 11 : i64} {
  func.func @_proj_kernel(%arg0: i32, %arg1: memref<128x128xbf16, #tpu.memory_space<vmem>>, %arg2: memref<128x384xbf16, #tpu.memory_space<vmem>>, %arg3: memref<128x128xbf16, #tpu.memory_space<vmem>>, %arg4: memref<128x256xbf16, #tpu.memory_space<vmem>>) attributes {dimension_semantics = [#tpu.dimension_semantics<parallel>], iteration_bounds = array<i64: 2>, scalar_prefetch = 0 : i64, scratch_operands = 0 : i64, tpu.core_type = #tpu.core_type<tc>, window_params = [{transform_indices = @transform_0, window_bounds = array<i64: 128, 128>}, {pipeline_mode = #tpu.pipeline_mode<synchronous>, transform_indices = @transform_1, window_bounds = array<i64: 128, 384>}, {transform_indices = @transform_2, window_bounds = array<i64: 128, 128>}, {transform_indices = @transform_3, window_bounds = array<i64: 128, 256>}]} {
    %c0 = arith.constant 0 : index
    %c0_0 = arith.constant 0 : index
    %0 = vector.load %arg1[%c0, %c0_0] : memref<128x128xbf16, #tpu.memory_space<vmem>>, vector<128x128xbf16>
    %c0_1 = arith.constant 0 : index
    %c0_2 = arith.constant 0 : index
    %1 = vector.load %arg2[%c0_1, %c0_2] : memref<128x384xbf16, #tpu.memory_space<vmem>>, vector<128x384xbf16>
    %cst = arith.constant dense<0.000000e+00> : vector<128x384xf32>
    %2 = tpu.matmul %0, %1, %cst {dimension_numbers = #tpu.dot_dimension_numbers<[1], [0], [0], [1], [0, 0, 1, 1], [], []>} : vector<128x128xbf16>, vector<128x384xbf16>, vector<128x384xf32> -> vector<128x384xf32>
    %3 = vector.extract_strided_slice %2 {offsets = [0, 0], sizes = [128, 128], strides = [1, 1]} : vector<128x384xf32> to vector<128x128xf32>
    %4 = arith.truncf %3 : vector<128x128xf32> to vector<128x128xbf16>
    %c0_3 = arith.constant 0 : index
    %c0_4 = arith.constant 0 : index
    %5 = vector.load %arg3[%c0_3, %c0_4] : memref<128x128xbf16, #tpu.memory_space<vmem>>, vector<128x128xbf16>
    tpu.vector_store %arg3[%c0_3, %c0_4], %4 {strides = array<i32>} : memref<128x128xbf16, #tpu.memory_space<vmem>>, vector<128x128xbf16>,
    %6 = vector.extract_strided_slice %2 {offsets = [0, 128], sizes = [128, 256], strides = [1, 1]} : vector<128x384xf32> to vector<128x256xf32>
    %7 = arith.truncf %6 : vector<128x256xf32> to vector<128x256xbf16>
    %c0_5 = arith.constant 0 : index
    %c0_6 = arith.constant 0 : index
    %8 = vector.load %arg4[%c0_5, %c0_6] : memref<128x256xbf16, #tpu.memory_space<vmem>>, vector<128x256xbf16>
    tpu.vector_store %arg4[%c0_5, %c0_6], %7 {strides = array<i32>} : memref<128x256xbf16, #tpu.memory_space<vmem>>, vector<128x256xbf16>,
    return
  }
  func.func @transform_0(%arg0: i32) -> (i32, i32) {
    %c0_i32 = arith.constant 0 : i32
    %c0_i32_0 = arith.constant 0 : i32
    return %arg0, %c0_i32 : i32, i32
  }
  func.func @transform_1(%arg0: i32) -> (i32, i32) {
    %c0_i32 = arith.constant 0 : i32
    %c0_i32_0 = arith.constant 0 : i32
    %c0_i32_1 = arith.constant 0 : i32
    return %c0_i32, %c0_i32_0 : i32, i32
  }
  func.func @transform_2(%arg0: i32) -> (i32, i32) {
    %c0_i32 = arith.constant 0 : i32
    %c0_i32_0 = arith.constant 0 : i32
    return %arg0, %c0_i32 : i32, i32
  }
  func.func @transform_3(%arg0: i32) -> (i32, i32) {
    %c0_i32 = arith.constant 0 : i32
    %c0_i32_0 = arith.constant 0 : i32
    return %arg0, %c0_i32 : i32, i32
  }
}

</mosaic_0001>

<bundles_post_ra>
// kernel: tpu_custom_call.1
= control target key start
LH: loop header
LB: loop body
LE: loop exit
PB: predicated region body
PF: predicated region fallthrough
CT: control target
= control target key end

     0   :  { %9 = vsyncpa [#allocation3], 0  ;;  %s1804_s0 = inlined_call_operand.hbm [shape: bf16[256,128], index: 0, kind: input, shape index: {}]   ;;  %s1805_s1 = inlined_call_operand.hbm [shape: bf16[128,384], index: 1, kind: input, shape index: {}]   ;;  %s1806_s2 = inlined_call_operand.hbm [shape: bf16[256,128], index: 2, kind: output, shape index: {0}]   ;;  %s1807_s3 = inlined_call_operand.hbm [shape: bf16[256,256], index: 3, kind: output, shape index: {1}]  }
   0x1   :  { %11 = vsyncpa [#allocation3 + $0x1], 0 }
   0x2   :  { %12 = vsyncpa [#allocation6], 0 }
   0x3   :  { %13 = vsyncpa [#allocation4], 0 }
   0x4   :  { %15 = vsyncpa [#allocation4 + $0x1], 0 }
   0x5   :  { %16 = vsyncpa [#allocation9], 0 }
   0x6   :  { %18 = vsyncpa [#allocation9 + $0x1], 0  ;;  %s1518_s12 = smov 0   ;;  %s1520_s13 = smov 0  }
   0x7   :  { %s1522_s14 = smov 0   ;;  %s1524_s15 = smov 0  }
   0x8 LB: > { %s1539_s16 = sadd.s32 4294967295, %s1483_s15   ;;  %s996_s17 = sadd.s32 4294967294, %s1483_s15   ;;  %s1483_s15 = sphi %s1524_s15, %s1827_s15   ;;  %s1479_s14 = sphi %s1522_s14, %s1826_s14   ;;  %s1475_s13 = sphi %s1520_s13, %s1825_s13   ;;  %s1471_s12 = sphi %s1518_s12, %s1824_s12  }
   0x9   : > { %p44_p0 = scmp.ne.s32.totalorder %s1475_s13, %s1471_s12  ;;  %p1808_p1 = scmp.eq.s32.totalorder %s1539_s16, 0 }
   0xa   : > { %p95_p3 = scmp.eq.s32.totalorder %s996_s17, 1  ;;  %p997_p5 = scmp.ge.s32.totalorder %s1483_s15, 1 }
   0xb   : > { %p1548_p4 = por %p1808_p1, %p44_p0  ;;  %p128_p7 = scmp.lt.s32.totalorder %s1483_s15, 3 }
   0xc   : > { %p1553_p6 = por %p95_p3, %p44_p0  ;;  %s1485_s21 = smov [#allocation5]  }
   0xd   : > { %s1811_s18 = scalar_select %p1548_p4, 1, 0 }
   0xe   : > { %s1812_s19 = scalar_select %p1553_p6, 1, 0 }
   0xf   : > { %p1558_p8 = pnand %p997_p5, %p128_p7  ;;  %s140_s22 = sshll.u32 %s1485_s21, 4  ;;  %s1562_s22 = int_to_ptr.vmem [resolvable:$true] %s140_s22 }
  0x10   : > { %s1574_s24 = sadd.s32 1, %s1483_s15   ;;  %s31_s25 = sadd.s32 1, %s1479_s14 }
  0x11   : > { %s1813_s20 = scalar_select %p1558_p8, 1, 0 }
  0x12   : > { %p1222_p9 = pneg %p1558_p8  ;;  %s28_s26 = ssub.s32 %s1483_s15, %s1574_s24 }
  0x13   : > { %s1323_s29 = scalar_lea.hbm %s1805_s1, 3072 }
  0x14   : > { %p1569_p11 = pnand %p1222_p9, %p1808_p1  ;;  %p1324_p12 = scmp.ne.s32.totalorder %s1805_s1, %s1323_s29 }
  0x15   : > { %p1330_p5 = scmp.lt.u32.totalorder %s1323_s29, %s1805_s1 }
  0x16   : > { %p1325_p13 = pneg %p1569_p11 }
  0x18   : > { %p1326_p0 = pnand %p1325_p13, %p1324_p12 }
  0x1a   : > { %p1327_p3 = pneg %p1326_p0 }
  0x1c   : > { %p1332_p7 = pnand %p1330_p5, %p1327_p3 }
  0x1e   : > { %1335 = shalt.err (!%p1332_p7)
}
  0x1f   : > { %s1336_s7 = scalar_lea.vmem %s1562_s22, 3072  ;;  %p1344_p2 = scmp.lt.s32.totalorder %s1562_s22, %s1562_s22 }
  0x20   : > { %p1337_p9 = scmp.ne.s32.totalorder %s1562_s22, %s1336_s7  ;;  %p1345_p6 = scmp.lt.s32.totalorder %s1336_s7, %s1336_s7 }
  0x22   : > { %p1339_p10 = pnand %p1337_p9, %p1325_p13  ;;  %p1346_p4 = por %p1345_p6, %p1344_p2 }
  0x24   : > { %p1340_p1 = pneg %p1339_p10 }
  0x26   : > { %p1347_p8 = pnand %p1346_p4, %p1340_p1 }
  0x28   : > { %1350 = shalt.err (!%p1347_p8)
}
  0x29   : > { %s1486_s8 = smov 192   ;;  %s1487_s9 = smov 12  }
  0x2a   : > { %1225 = dma.hbm_to_vmem [thread:$0]  (!%p1569_p11), %s1805_s1, 3072, %s1562_s22, [#allocation6], %s1486_s8, %s1486_s8, %s1487_s9  }
  0x2b   : > { %p29_p2 = scmp.eq.s32.totalorder %s28_s26, 0  ;;  %p38_p1 = scmp.ne.s32.totalorder %s1479_s14, %s1475_s13 }
  0x2c   : > { %p39_p4 = scmp.eq.s32.totalorder %s1483_s15, 0  ;;  %p1238_p6 = scmp.lt.s32.totalorder %s1483_s15, 2 }
  0x2d   : > { %s1605_s17 = scalar_select %p29_p2, %s1479_s14, %s31_s25  }
  0x2e   : > { %p40_p8 = por %p39_p4, %p38_p1  ;;  %p1815_p10 = scmp.eq.s32.totalorder %s1539_s16, 1 }
  0x2f   : > { %s154_s27 = sand.u32 1, %s1479_s14   ;;  %s1081_s28 = sshll.u32 %s1483_s15, 10 }
  0x30   : > { %p1609_p12 = por %p1815_p10, %p38_p1  ;;  %s1000_s29 = sshll.u32 %s154_s27, 6 }
  0x31   : > { %s1618_s4 = scalar_lea.hbm %s1804_s0, %s1081_s28  ;;  %s158_s22 = scalar_lea.vmem [#allocation2], %s1000_s29 }
  0x32   : > { %s165_s25 = sshll.u32 %s158_s22, 4  ;;  %p1620_p11 = pnand %p1238_p6, %p40_p8  ;;  %s1624_s25 = int_to_ptr.vmem [resolvable:$true] %s165_s25 }
  0x33   : > { %s1626_s5 = scalar_lea.sflag [#allocation3], %s154_s27  ;;  %s1351_s6 = scalar_lea.hbm %s1618_s4, 1024 }
  0x34   : > { %p1352_p13 = scmp.ne.s32.totalorder %s1618_s4, %s1351_s6  ;;  %p1353_p0 = pneg %p1620_p11 }
  0x35   : > { %s1356_s9 = scalar_lea.hbm %s1804_s0, 2048  ;;  %p1357_p7 = scmp.lt.u32.totalorder %s1618_s4, %s1804_s0 }
  0x36   : > { %p1354_p3 = pnand %p1353_p0, %p1352_p13  ;;  %p1358_p9 = scmp.lt.u32.totalorder %s1356_s9, %s1351_s6 }
  0x37   : > { %p1360_p1 = scmp.lt.u32.totalorder %s1351_s6, %s1618_s4 }
  0x38   : > { %p1355_p5 = pneg %p1354_p3  ;;  %p1359_p2 = por %p1358_p9, %p1357_p7 }
  0x3a   : > { %p1361_p4 = por %p1360_p1, %p1359_p2 }
  0x3c   : > { %p1362_p6 = pnand %p1361_p4, %p1355_p5 }
  0x3e   : > { %1365 = shalt.err (!%p1362_p6)
}
  0x3f   : > { %s1366_s27 = scalar_lea.vmem %s1624_s25, 1024  ;;  %s1488_s28 = smov [#allocation2]  }
  0x40   : > { %p1367_p8 = scmp.ne.s32.totalorder %s1624_s25, %s1366_s27  ;;  %s1371_s29 = sshll.u32 %s1488_s28, 4  ;;  %s1372_s29 = int_to_ptr.vmem [resolvable:$false] %s1371_s29 }
  0x41   : > { %s1373_s23 = scalar_lea.vmem %s1372_s29, 2048  ;;  %p1374_p3 = scmp.lt.s32.totalorder %s1624_s25, %s1372_s29 }
  0x42   : > { %p1369_p10 = pnand %p1367_p8, %p1353_p0  ;;  %p1375_p7 = scmp.lt.s32.totalorder %s1373_s23, %s1366_s27 }
  0x44   : > { %p1370_p13 = pneg %p1369_p10  ;;  %p1376_p9 = por %p1375_p7, %p1374_p3 }
  0x46   : > { %p1377_p2 = pnand %p1376_p9, %p1370_p13 }
  0x48   : > { %1380 = shalt.err (!%p1377_p2)
}
  0x49   : > { %s1489_s30 = smov 64   ;;  %s1490_s22 = smov 4  }
  0x4a   : > { %1229 = dma.hbm_to_vmem [thread:$0]  (!%p1620_p11), %s1618_s4, 1024, %s1624_s25, %s1626_s5, %s1489_s30, %s1489_s30, %s1490_s22  }
  0x4b   : > { %p1818_p0 = scmp.ne.s32.totalorder %s1813_s20, 0 }
  0x4c   : > { %s1657_s6 = sand.u32 (!%p1818_p0), 1, %s1475_s13   ;;  %p1819_p5 = scmp.ne.s32.totalorder (!%p1818_p0), %s1811_s18, 0 }
  0x4d   : > { %177 = sbr.rel (%p1818_p0) target bundleno = 433 (0x1b1), region = 28  ;;  %s1004_s7 = sshll.u32 (!%p1818_p0), %s1657_s6, 6 }
  0x4e   : > { %s180_s8 = scalar_lea.sflag (!%p1818_p0), [#allocation3], %s1657_s6  ;;  %s1663_s9 = scalar_lea.vmem (!%p1818_p0), [#allocation2], %s1004_s7 }
  0x54   : > { %1454 = dma.done.wait (%p1819_p5), %s180_s8, 1024  }
  0x55   : > { %1456 = vsyncadd (%p1819_p5), %s180_s8, 4294966272  ;;  %p1820_p11 = scmp.eq.s32.totalorder %s1539_s16, 0 }
  0x57   : > { %1458 = dma.done.wait (%p1820_p11), [#allocation6], 3072   ;;  %p1821_p1 = pmov %p1820_p11 }
  0x58   : > { %v1491_v0 = vmov 0   ;;  %v1283_v1 = vld [vmem:[#allocation5 + $0x4] ss:$12 sps:$4 sm:$0xff]   ;;  %v1285_v2 = vld [vmem:[#allocation5 + $0x8] ss:$12 sps:$4 sm:$0xff]   ;;  %v1318_v28 = vld [vmem:[%s1663_s9 + $0x18] sm:$0xff]  }
  0x59   : > { %1460 = vsyncadd (%p1821_p1), [#allocation6], 4294964224  ;;  %475 = vmatprep.mubr.bf16.mxu0 %v1491_v0  ;;  %443 = vmatprep.subr.bf16.mxu0 %v1283_v1  ;;  %v1286_v3 = vld [vmem:[#allocation5] ss:$12 sps:$4 sm:$0xff]   ;;  %v1287_v4 = vld [vmem:[#allocation5 + $0x1c] ss:$12 sps:$4 sm:$0xff]  }
  0x5a   : > { %1180 = vmatprep.subr.bf16.mxu1 %v1285_v2  ;;  %444 = vmatpush1.bf16.msra.mxu0 %v1286_v3  ;;  %v1289_v5 = vld [vmem:[#allocation5 + $0x20] ss:$12 sps:$4 sm:$0xff]   ;;  %v1290_v6 = vld [vmem:[#allocation5 + $0x18] ss:$12 sps:$4 sm:$0xff]   ;;  %v1294_v9 = vld [vmem:[#allocation5 + $0x30] ss:$12 sps:$4 sm:$0xff]  }
  0x5b   : > { %1181 = vmatpush3.bf16.msra.mxu1 %v1285_v2  ;;  %445 = vmatprep.subr.bf16.mxu0 %v1287_v4  ;;  %v1291_v7 = vld [vmem:[#allocation5 + $0x34] ss:$12 sps:$4 sm:$0xff]   ;;  %v1293_v8 = vld [vmem:[#allocation5 + $0x38] ss:$12 sps:$4 sm:$0xff]   ;;  %v1297_v11 = vld [vmem:[#allocation5 + $0x50] ss:$12 sps:$4 sm:$0xff]  }
  0x5c   : > { %1182 = vmatprep.subr.bf16.mxu1 %v1289_v5  ;;  %v1295_v10 = vld [vmem:[#allocation5 + $0x4c] ss:$12 sps:$4 sm:$0xff]   ;;  %v1298_v12 = vld [vmem:[#allocation5 + $0x48] ss:$12 sps:$4 sm:$0xff]   ;;  %v1299_v13 = vld [vmem:[#allocation5 + $0x64] ss:$12 sps:$4 sm:$0xff]  }
  0x5d   : > { %v1301_v14 = vld [vmem:[#allocation5 + $0x68] ss:$12 sps:$4 sm:$0xff]   ;;  %v1302_v15 = vld [vmem:[#allocation5 + $0x60] ss:$12 sps:$4 sm:$0xff]   ;;  %v1306_v18 = vld [vmem:[#allocation5 + $0x78] ss:$12 sps:$4 sm:$0xff]  }
  0x5e   : > { %446 = vmatpush1.bf16.msra.mxu0 %v1290_v6  ;;  %v1303_v16 = vld [vmem:[#allocation5 + $0x7c] ss:$12 sps:$4 sm:$0xff]   ;;  %v1305_v17 = vld [vmem:[#allocation5 + $0x80] ss:$12 sps:$4 sm:$0xff]   ;;  %v1309_v21 = vld [vmem:[#allocation5 + $0x98] ss:$12 sps:$4 sm:$0xff]  }
  0x5f   : > { %1183 = vmatpush3.bf16.msra.mxu1 %v1289_v5  ;;  %447 = vmatprep.subr.bf16.mxu0 %v1291_v7  ;;  %v1315_v19 = vld [vmem:[%s1663_s9] sm:$0xff]   ;;  %v1310_v22 = vld [vmem:[#allocation5 + $0x90] ss:$12 sps:$4 sm:$0xff]   ;;  %v1311_v23 = vld [vmem:[#allocation5 + $0xac] ss:$12 sps:$4 sm:$0xff]   ;;  %s1007_s18 = sshll.u32 %s1657_s6, 7 }
  0x60   : > { %1184 = vmatprep.subr.bf16.mxu1 %v1293_v8  ;;  %v1307_v20 = vld [vmem:[#allocation5 + $0x94] ss:$12 sps:$4 sm:$0xff]   ;;  %1196 = vmatprep.mubr.bf16.mxu1 %v1315_v19  ;;  %v1313_v24 = vld [vmem:[#allocation5 + $0xb0] ss:$12 sps:$4 sm:$0xff]   ;;  %v1316_v26 = vld [vmem:[%s1663_s9 + $0x8] sm:$0xff]   ;;  %s1690_s20 = scalar_lea.vmem [#allocation8], %s1007_s18 }
  0x61   : > { %v1314_v25 = vld [vmem:[#allocation5 + $0xa8] ss:$12 sps:$4 sm:$0xff]   ;;  %v1319_v29 = vld [vmem:[%s1663_s9 + $0x20] sm:$0xff]   ;;  %v1322_v32 = vld [vmem:[%s1663_s9 + $0x38] sm:$0xff]   ;;  %s1695_s4 = scalar_lea.vmem [#allocation7], %s1004_s7  ;;  %s1114_s26 = sshll.u32 %s1539_s16, 10 }
  0x62   : > { %448 = vmatpush1.bf16.msra.mxu0 %v1294_v9  ;;  %v1317_v27 = vld [vmem:[%s1663_s9 + $0x10] sm:$0xff]   ;;  %v1320_v30 = vld [vmem:[%s1663_s9 + $0x28] sm:$0xff]   ;;  %s864_s25 = sshll.u32 %s1695_s4, 4  ;;  %s1116_s5 = sshll.u32 %s1539_s16, 11  ;;  %s1719_s25 = int_to_ptr.vmem [resolvable:$true] %s864_s25 }
  0x63   : > { %1185 = vmatpush3.bf16.msra.mxu1 %v1293_v8  ;;  %449 = vmatprep.subr.bf16.mxu0 %v1295_v10  ;;  %v1321_v31 = vld [vmem:[%s1663_s9 + $0x30] sm:$0xff]   ;;  %s1725_s27 = scalar_lea.hbm %s1806_s2, %s1114_s26  ;;  %s881_s28 = sshll.u32 %s1690_s20, 4  ;;  %s1734_s28 = int_to_ptr.vmem [resolvable:$true] %s881_s28 }
  0x64   : > { %1186 = vmatprep.subr.bf16.mxu1 %v1297_v11  ;;  %s1731_s16 = scalar_lea.hbm %s1807_s3, %s1116_s5  ;;  %s846_s30 = scalar_lea.sflag [#allocation4], %s1657_s6 }
  0x65   : > { %s1381_s22 = scalar_lea.vmem %s1719_s25, 1024  ;;  %s1492_s7 = smov [#allocation7]  }
  0x66   : > { %450 = vmatpush1.bf16.msra.mxu0 %v1298_v12  ;;  %p1382_p4 = scmp.ne.s32.totalorder %s1719_s25, %s1381_s22  ;;  %s1385_s8 = sshll.u32 %s1492_s7, 4  ;;  %s1386_s8 = int_to_ptr.vmem [resolvable:$false] %s1385_s8 }
  0x67   : > { %1187 = vmatpush3.bf16.msra.mxu1 %v1297_v11  ;;  %451 = vmatprep.subr.bf16.mxu0 %v1299_v13  ;;  %s1387_s9 = scalar_lea.vmem %s1386_s8, 2048  ;;  %p1388_p10 = scmp.lt.s32.totalorder %s1719_s25, %s1386_s8 }
  0x68   : > { %1188 = vmatprep.subr.bf16.mxu1 %v1301_v14  ;;  %p1383_p6 = pnand %p1382_p4, %p1609_p12  ;;  %p1389_p13 = scmp.lt.s32.totalorder %s1387_s9, %s1381_s22 }
  0x6a   : > { %452 = vmatpush1.bf16.msra.mxu0 %v1302_v15  ;;  %p1384_p8 = pneg %p1383_p6  ;;  %p1390_p3 = por %p1389_p13, %p1388_p10 }
  0x6b   : > { %1189 = vmatpush3.bf16.msra.mxu1 %v1301_v14  ;;  %453 = vmatprep.subr.bf16.mxu0 %v1303_v16 }
  0x6c   : > { %1190 = vmatprep.subr.bf16.mxu1 %v1305_v17  ;;  %p1391_p7 = pnand %p1390_p3, %p1384_p8 }
  0x6e   : > { %454 = vmatpush1.bf16.msra.mxu0 %v1306_v18 }
  0x6f   : > { %1191 = vmatpush3.bf16.msra.mxu1 %v1305_v17  ;;  %455 = vmatprep.subr.bf16.mxu0 %v1307_v20 }
  0x70   : > { %1192 = vmatprep.subr.bf16.mxu1 %v1309_v21 }
  0x72   : > { %456 = vmatpush1.bf16.msra.mxu0 %v1310_v22 }
  0x73   : > { %1193 = vmatpush3.bf16.msra.mxu1 %v1309_v21  ;;  %457 = vmatprep.subr.bf16.mxu0 %v1311_v23 }
  0x74   : > { %1194 = vmatprep.subr.bf16.mxu1 %v1313_v24 }
  0x76   : > { %458 = vmatpush1.bf16.msra.mxu0 %v1314_v25 }
  0x77   : > { %1195 = vmatpush3.bf16.msra.mxu1 %v1313_v24 }
  0x79   : > { %476 = vmatmul.mubr.bf16.vlgmr.msra.gmra.mrb[0].mxu0 %v1315_v19 }
  0x7a   : > { %1197 = vmatmul.mubr.bf16.vlgmr.msra.gmra.mrb[0].mxu1 %v1316_v26  ;;  %485 = vmatprep.mubr.bf16.mxu0 %v1491_v0 }
  0x7b   : > { %1200 = vmatprep.mubr.bf16.mxu1 %v1317_v27 }
  0x81   : > { %486 = vmatmul.mubr.bf16.gmra.mrb[4].mxu0 %v1316_v26 }
  0x82   : > { %1201 = vmatmul.mubr.bf16.gmra.mrb[4].mxu1 %v1318_v28  ;;  %495 = vmatprep.mubr.bf16.mxu0 %v1491_v0 }
  0x83   : > { %1204 = vmatprep.mubr.bf16.mxu1 %v1319_v29 }
  0x89   : > { %496 = vmatmul.mubr.bf16.gmra.mrb[8].mxu0 %v1317_v27 }
  0x8a   : > { %1205 = vmatmul.mubr.bf16.gmra.mrb[8].mxu1 %v1320_v30  ;;  %505 = vmatprep.mubr.bf16.mxu0 %v1491_v0 }
  0x8b   : > { %1208 = vmatprep.mubr.bf16.mxu1 %v1321_v31 }
  0x91   : > { %506 = vmatmul.mubr.bf16.gmra.mrb[12].mxu0 %v1318_v28 }
  0x92   : > { %1209 = vmatmul.mubr.bf16.gmra.mrb[12].mxu1 %v1322_v32  ;;  %515 = vmatprep.mubr.bf16.mxu0 %v1491_v0 }
  0x99   : > { %516 = vmatmul.mubr.bf16.gmra.mrb[16].mxu0 %v1319_v29 }
  0x9a   : > { %525 = vmatprep.mubr.bf16.mxu0 %v1491_v0 }
  0xa1   : > { %526 = vmatmul.mubr.bf16.gmra.mrb[20].mxu0 %v1320_v30 }
  0xa2   : > { %535 = vmatprep.mubr.bf16.mxu0 %v1491_v0 }
  0xa9   : > { %536 = vmatmul.mubr.bf16.gmra.mrb[24].mxu0 %v1321_v31 }
  0xaa   : > { %545 = vmatprep.mubr.bf16.mxu0 %v1491_v0 }
  0xb1   : > { %546 = vmatmul.mubr.bf16.gmra.mrb[28].mxu0 %v1322_v32 }
 0x14c   : > { %v477_v33 = vpop.f32.mrb[0].mxu0 }
 0x14d   : > { %v1198_v34 = vpop.f32.mrb[0].mxu1  ;;  %v479_v35 = vpop.f32.mrb[1].mxu0 }
 0x14e   : > { %v590_v36 = vpop.f32.mrb[1].mxu1  ;;  %v481_v38 = vpop.f32.mrb[2].mxu0 }
 0x14f   : > { %v1098_v37 = vpack.c.bf16 %v590_v36, %v479_v35  ;;  %v1199_v39 = vpop.f32.mrb[2].mxu1  ;;  %v1120_v40 = vpack.c.bf16 %v481_v38, %v477_v33  ;;  %v483_v41 = vpop.f32.mrb[3].mxu0 }
 0x150   : > { %v593_v42 = vpop.f32.mrb[3].mxu1 }
 0x151   : > { %829 = vst [vmem:[%s1690_s20] sm:$0xff] %v1098_v37  ;;  %v1099_v43 = vpack.c.bf16 %v593_v42, %v483_v41  ;;  %1121 = vst [vmem:[%s1695_s4] sm:$0xff] %v1120_v40  }
 0x153   : > { %830 = vst [vmem:[%s1690_s20 + $0x8] sm:$0xff] %v1099_v43 }
 0x154   : > { %v487_v44 = vpop.f32.mrb[4].mxu0 }
 0x155   : > { %v1202_v45 = vpop.f32.mrb[4].mxu1  ;;  %v489_v46 = vpop.f32.mrb[5].mxu0 }
 0x156   : > { %v606_v47 = vpop.f32.mrb[5].mxu1  ;;  %v1100_v48 = vpack.c.bf16 %v1198_v34, %v489_v46  ;;  %v491_v49 = vpop.f32.mrb[6].mxu0 }
 0x157   : > { %v1203_v50 = vpop.f32.mrb[6].mxu1  ;;  %v1125_v51 = vpack.c.bf16 %v491_v49, %v487_v44  ;;  %v493_v52 = vpop.f32.mrb[7].mxu0 }
 0x158   : > { %v609_v53 = vpop.f32.mrb[7].mxu1  ;;  %831 = vst [vmem:[%s1690_s20 + $0x10] sm:$0xff] %v1100_v48  ;;  %v1101_v54 = vpack.c.bf16 %v1199_v39, %v493_v52 }
 0x159   : > { %1157 = vst [vmem:[%s1695_s4 + $0x8] sm:$0xff] %v1125_v51  }
 0x15a   : > { %832 = vst [vmem:[%s1690_s20 + $0x18] sm:$0xff] %v1101_v54 }
 0x15c   : > { %v497_v55 = vpop.f32.mrb[8].mxu0 }
 0x15d   : > { %v1206_v56 = vpop.f32.mrb[8].mxu1  ;;  %v499_v57 = vpop.f32.mrb[9].mxu0 }
 0x15e   : > { %v622_v58 = vpop.f32.mrb[9].mxu1  ;;  %v1102_v59 = vpack.c.bf16 %v606_v47, %v499_v57  ;;  %v501_v60 = vpop.f32.mrb[10].mxu0 }
 0x15f   : > { %v1207_v61 = vpop.f32.mrb[10].mxu1  ;;  %v1130_v62 = vpack.c.bf16 %v501_v60, %v497_v55  ;;  %v503_v63 = vpop.f32.mrb[11].mxu0 }
 0x160   : > { %v625_v0 = vpop.f32.mrb[11].mxu1  ;;  %833 = vst [vmem:[%s1690_s20 + $0x20] sm:$0xff] %v1102_v59  ;;  %v1103_v1 = vpack.c.bf16 %v609_v53, %v503_v63 }
 0x161   : > { %1158 = vst [vmem:[%s1695_s4 + $0x10] sm:$0xff] %v1130_v62  }
 0x162   : > { %834 = vst [vmem:[%s1690_s20 + $0x28] sm:$0xff] %v1103_v1 }
 0x164   : > { %v507_v2 = vpop.f32.mrb[12].mxu0 }
 0x165   : > { %v1210_v3 = vpop.f32.mrb[12].mxu1  ;;  %v509_v4 = vpop.f32.mrb[13].mxu0 }
 0x166   : > { %v638_v5 = vpop.f32.mrb[13].mxu1  ;;  %v1104_v6 = vpack.c.bf16 %v1202_v45, %v509_v4  ;;  %v511_v7 = vpop.f32.mrb[14].mxu0 }
 0x167   : > { %v1211_v8 = vpop.f32.mrb[14].mxu1  ;;  %v1135_v9 = vpack.c.bf16 %v511_v7, %v507_v2  ;;  %v513_v10 = vpop.f32.mrb[15].mxu0 }
 0x168   : > { %v641_v11 = vpop.f32.mrb[15].mxu1  ;;  %835 = vst [vmem:[%s1690_s20 + $0x30] sm:$0xff] %v1104_v6  ;;  %v1105_v12 = vpack.c.bf16 %v1203_v50, %v513_v10 }
 0x169   : > { %1159 = vst [vmem:[%s1695_s4 + $0x18] sm:$0xff] %v1135_v9  }
 0x16a   : > { %836 = vst [vmem:[%s1690_s20 + $0x38] sm:$0xff] %v1105_v12 }
 0x16c   : > { %v517_v13 = vpop.f32.mrb[16].mxu0 }
 0x16d   : > { %v519_v14 = vpop.f32.mrb[17].mxu0 }
 0x16e   : > { %v1106_v15 = vpack.c.bf16 %v622_v58, %v519_v14  ;;  %v521_v16 = vpop.f32.mrb[18].mxu0 }
 0x16f   : > { %v1140_v17 = vpack.c.bf16 %v521_v16, %v517_v13  ;;  %v523_v18 = vpop.f32.mrb[19].mxu0 }
 0x170   : > { %837 = vst [vmem:[%s1690_s20 + $0x40] sm:$0xff] %v1106_v15  ;;  %v1107_v19 = vpack.c.bf16 %v625_v0, %v523_v18 }
 0x171   : > { %1160 = vst [vmem:[%s1695_s4 + $0x20] sm:$0xff] %v1140_v17  }
 0x172   : > { %838 = vst [vmem:[%s1690_s20 + $0x48] sm:$0xff] %v1107_v19 }
 0x174   : > { %v527_v20 = vpop.f32.mrb[20].mxu0 }
 0x175   : > { %v529_v21 = vpop.f32.mrb[21].mxu0 }
 0x176   : > { %v1108_v22 = vpack.c.bf16 %v1206_v56, %v529_v21  ;;  %v531_v23 = vpop.f32.mrb[22].mxu0 }
 0x177   : > { %v1145_v24 = vpack.c.bf16 %v531_v23, %v527_v20  ;;  %v533_v25 = vpop.f32.mrb[23].mxu0 }
 0x178   : > { %839 = vst [vmem:[%s1690_s20 + $0x50] sm:$0xff] %v1108_v22  ;;  %v1109_v26 = vpack.c.bf16 %v1207_v61, %v533_v25 }
 0x179   : > { %1161 = vst [vmem:[%s1695_s4 + $0x28] sm:$0xff] %v1145_v24  }
 0x17a   : > { %840 = vst [vmem:[%s1690_s20 + $0x58] sm:$0xff] %v1109_v26 }
 0x17c   : > { %v537_v27 = vpop.f32.mrb[24].mxu0 }
 0x17d   : > { %v539_v28 = vpop.f32.mrb[25].mxu0 }
 0x17e   : > { %v1110_v29 = vpack.c.bf16 %v638_v5, %v539_v28  ;;  %v541_v30 = vpop.f32.mrb[26].mxu0 }
 0x17f   : > { %v1150_v31 = vpack.c.bf16 %v541_v30, %v537_v27  ;;  %v543_v32 = vpop.f32.mrb[27].mxu0 }
 0x180   : > { %841 = vst [vmem:[%s1690_s20 + $0x60] sm:$0xff] %v1110_v29  ;;  %v1111_v33 = vpack.c.bf16 %v641_v11, %v543_v32 }
 0x181   : > { %1162 = vst [vmem:[%s1695_s4 + $0x30] sm:$0xff] %v1150_v31  }
 0x182   : > { %842 = vst [vmem:[%s1690_s20 + $0x68] sm:$0xff] %v1111_v33 }
 0x184   : > { %v547_v34 = vpop.f32.mrb[28].mxu0 }
 0x185   : > { %v549_v35 = vpop.f32.mrb[29].mxu0 }
 0x186   : > { %v1112_v36 = vpack.c.bf16 %v1210_v3, %v549_v35  ;;  %v551_v37 = vpop.f32.mrb[30].mxu0 }
 0x187   : > { %v1155_v38 = vpack.c.bf16 %v551_v37, %v547_v34  ;;  %v553_v39 = vpop.f32.mrb[31].mxu0 }
 0x188   : > { %843 = vst [vmem:[%s1690_s20 + $0x70] sm:$0xff] %v1112_v36  ;;  %v1113_v40 = vpack.c.bf16 %v1211_v8, %v553_v39 }
 0x189   : > { %1163 = vst [vmem:[%s1695_s4 + $0x38] sm:$0xff] %v1155_v38  }
 0x18a   : > { %844 = vst [vmem:[%s1690_s20 + $0x78] sm:$0xff] %v1113_v40 }
 0x18b   : > { %1394 = shalt.err (!%p1391_p7)
}
 0x18c   : > { %s1395_s18 = scalar_lea.hbm %s1725_s27, 1024  ;;  %s1399_s26 = scalar_lea.hbm %s1806_s2, 2048 }
 0x18d   : > { %p1396_p9 = scmp.ne.s32.totalorder %s1725_s27, %s1395_s18  ;;  %p1400_p5 = scmp.lt.u32.totalorder %s1725_s27, %s1806_s2 }
 0x18e   : > { %p1401_p11 = scmp.lt.u32.totalorder %s1399_s26, %s1395_s18  ;;  %p1403_p4 = scmp.lt.u32.totalorder %s1395_s18, %s1725_s27 }
 0x18f   : > { %p1397_p2 = pnand %p1396_p9, %p1609_p12 }
 0x190   : > { %p1402_p1 = por %p1401_p11, %p1400_p5 }
 0x191   : > { %p1398_p0 = pneg %p1397_p2 }
 0x192   : > { %p1404_p6 = por %p1403_p4, %p1402_p1 }
 0x194   : > { %p1405_p8 = pnand %p1404_p6, %p1398_p0 }
 0x196   : > { %1408 = shalt.err (!%p1405_p8)
}
 0x197   : > { %s1493_s11 = smov 64   ;;  %s1494_s29 = smov 4  }
 0x198   : > { %1218 = dma.vmem_to_hbm [thread:$0]  (%p1609_p12), %s1719_s25, 1024, %s1725_s27, %s846_s30, %s1493_s11, %s1493_s11, %s1494_s29  }
 0x199   : > { %s851_s23 = scalar_lea.sflag [#allocation9], %s1657_s6  ;;  %s1409_s22 = scalar_lea.vmem %s1734_s28, 2048 }
 0x19a   : > { %p1410_p10 = scmp.ne.s32.totalorder %s1734_s28, %s1409_s22  ;;  %s1495_s7 = smov [#allocation8]  }
 0x19b   : > { %s1413_s8 = sshll.u32 %s1495_s7, 4  ;;  %s1414_s8 = int_to_ptr.vmem [resolvable:$false] %s1413_s8 }
 0x19c   : > { %p1411_p13 = pnand %p1410_p10, %p1609_p12  ;;  %s1415_s9 = scalar_lea.vmem %s1414_s8, 4096 }
 0x19d   : > { %p1416_p7 = scmp.lt.s32.totalorder %s1734_s28, %s1414_s8  ;;  %p1417_p9 = scmp.lt.s32.totalorder %s1415_s9, %s1409_s22 }
 0x19e   : > { %p1412_p3 = pneg %p1411_p13 }
 0x19f   : > { %p1418_p2 = por %p1417_p9, %p1416_p7 }
 0x1a1   : > { %p1419_p0 = pnand %p1418_p2, %p1412_p3 }
 0x1a3   : > { %1422 = shalt.err (!%p1419_p0)
}
 0x1a4   : > { %s1423_s25 = scalar_lea.hbm %s1731_s16, 2048  ;;  %s1427_s18 = scalar_lea.hbm %s1807_s3, 4096 }
 0x1a5   : > { %p1424_p5 = scmp.ne.s32.totalorder %s1731_s16, %s1423_s25  ;;  %p1428_p4 = scmp.lt.u32.totalorder %s1731_s16, %s1807_s3 }
 0x1a6   : > { %p1429_p6 = scmp.lt.u32.totalorder %s1427_s18, %s1423_s25  ;;  %p1431_p10 = scmp.lt.u32.totalorder %s1423_s25, %s1731_s16 }
 0x1a7   : > { %p1425_p11 = pnand %p1424_p5, %p1609_p12 }
 0x1a8   : > { %p1430_p8 = por %p1429_p6, %p1428_p4 }
 0x1a9   : > { %p1426_p1 = pneg %p1425_p11 }
 0x1aa   : > { %p1432_p13 = por %p1431_p10, %p1430_p8 }
 0x1ac   : > { %p1433_p3 = pnand %p1432_p13, %p1426_p1 }
 0x1ae   : > { %1436 = shalt.err (!%p1433_p3)
}
 0x1af   : > { %s1496_s26 = smov 128   ;;  %s1497_s5 = smov 8  }
 0x1b0   : > { %1219 = dma.vmem_to_hbm [thread:$0]  (%p1609_p12), %s1734_s28, 2048, %s1731_s16, %s851_s23, %s1496_s26, %s1496_s26, %s1497_s5  }
 0x1b1 PF: > { %s896_s10 = sand.u32 1, %s1471_s12   ;;  %p1822_p7 = scmp.ne.s32.totalorder %s1812_s19, 0 }
 0x1b2   : > { %p1823_p9 = scmp.ge.s32.totalorder %s1483_s15, 2  ;;  %s897_s11 = scalar_lea.sflag [#allocation4], %s896_s10 }
 0x1b4   : > { %p1231_p2 = pnand %p1823_p9, %p1822_p7 }
 0x1b6   : > { %1462 = dma.done.wait (!%p1231_p2), %s897_s11, 1024  }
 0x1b7   : > { %1464 = vsyncadd (!%p1231_p2), %s897_s11, 4294966272  ;;  %s906_s29 = scalar_lea.sflag [#allocation9], %s896_s10 }
 0x1b8   : > { %1466 = dma.done.wait (!%p1231_p2), %s906_s29, 2048  }
 0x1b9   : > { %1468 = vsyncadd (!%p1231_p2), %s906_s29, 4294965248  ;;  %p21_p12 = scmp.ge.s32.totalorder %s1574_s24, 4   ;;  %s1824_s12 = smov %s1475_s13 }
 0x1ba   : > { %s1825_s13 = smov %s1479_s14  ;;  %s1826_s14 = smov %s1605_s17 }
 0x1bb   : > { %s1827_s15 = smov %s1574_s24  ;;  %23 = sbr.rel (!%p21_p12) target bundleno = 8 (0x8), region = 94 }
 0x1c2   :  { %911 = vsyncpa [#allocation3], 1 }
 0x1c3   :  { %913 = vsyncpa [#allocation3 + $0x1], 1 }
 0x1c4   :  { %914 = vsyncpa [#allocation6], 1 }
 0x1c5   :  { %915 = vsyncpa [#allocation4], 1 }
 0x1c6   :  { %917 = vsyncpa [#allocation4 + $0x1], 1 }
 0x1c7   :  { %918 = vsyncpa [#allocation9], 1 }
 0x1c8   :  { %920 = vsyncpa [#allocation9 + $0x1], 1 }

</bundles_post_ra>
